<compile_context>
chip_gen: v5e
topology: v5e:2x2
jax: 0.10.0
libtpu: 0.0.40
codegen_flags: <defaults>
</compile_context>

<pallas_src>
import functools
from typing import NamedTuple

import jax
import jax.numpy as jnp
from jax.experimental import pallas as pl
from jax.experimental.pallas import tpu as pltpu


# ---------------------------------------------------------------------------
# Helpers
# ---------------------------------------------------------------------------
def _round_up(n, m):
    return ((n + m - 1) // m) * m


def _pad2d(a, rows, cols):
    return jnp.pad(a, ((0, rows - a.shape[0]), (0, cols - a.shape[1])))


def _hw_config():
    """(lane, num_tensorcores) for the current TPU generation.

    v6e/v7x have a 2x256x256 MXU -> pad contraction/output dims to 256 lanes;
    v5e (4x128x128) and unknown chips stay at 128.  v7x has 2 TensorCores per
    chip, so the 'parallel' batch axis can be sharded across cores.
    """
    lane, cores = 128, 1
    try:
        kind = jax.devices()[0].device_kind.lower()
    except Exception:
        return lane, cores
    if "v6" in kind:
        lane = 256
    elif "v7" in kind:
        lane, cores = 256, 2
    return lane, cores


class _Meta(NamedTuple):
    D: int
    O: int
    Dp: int
    Hp: int
    Op: int
    cores: int


# ---------------------------------------------------------------------------
# Kernel
# ---------------------------------------------------------------------------
def _mlp_kernel(x_ref, w1_ref, b1_ref, w3_ref, b3_ref, y_ref):
    # fc1 on the MXU: (tm, Dp)bf16 @ (Dp, Hp)bf16 -> f32 accumulator.
    acc1 = jnp.dot(x_ref[...], w1_ref[...], preferred_element_type=jnp.float32)
    # Bias + ReLU in f32 on the VPU (no bf16 elementwise work -> v5e-safe).
    # relu(relu(x)) == relu(x), so the double ReLU of the module is applied once.
    z = jnp.maximum(acc1 + b1_ref[...], 0.0)
    # fc3: cast only at the MXU input; epilogue stays f32.
    acc2 = jnp.dot(z.astype(w3_ref.dtype), w3_ref[...],
                   preferred_element_type=jnp.float32)
    y_ref[...] = (acc2 + b3_ref[...]).astype(y_ref.dtype)


# ---------------------------------------------------------------------------
# One-time parameter layout prep (hoisted out of the per-call forward path)
# ---------------------------------------------------------------------------
def prepare_params(params, *, lane=None, cores=None):
    """Pre-transpose weights to (in, out), zero-pad to lane multiples and cast
    matmul operands to bf16.  Biases stay f32.  Done once per parameter set.

    params = (w1, b1, w2, b2, w3, b3); w2/b2 are intentionally ignored — fc2
    is never applied in the PyTorch forward().
    """
    w1, b1, _w2, _b2, w3, b3 = params
    hw_lane, hw_cores = _hw_config()
    lane = hw_lane if lane is None else lane
    cores = hw_cores if cores is None else cores

    H1, D = w1.shape
    O, H2 = w3.shape
    # fc2 is skipped, so fc3 consumes fc1's activations directly; that is only
    # well-defined (also in PyTorch) when hidden1_size == hidden2_size.
    assert H2 == H1, (
        f"fc3 in_features ({H2}) must equal fc1 out_features ({H1}) because "
        f"fc2 is never applied in forward()")

    Dp = _round_up(D, lane)
    Hp = _round_up(H1, lane)
    Op = _round_up(O, lane)

    w1_p = _pad2d(w1.T, Dp, Hp).astype(jnp.bfloat16)
    w3_p = _pad2d(w3.T, Hp, Op).astype(jnp.bfloat16)
    b1_p = _pad2d(b1.reshape(1, H1).astype(jnp.float32), 1, Hp)
    b3_p = _pad2d(b3.reshape(1, O).astype(jnp.float32), 1, Op)

    meta = _Meta(D=D, O=O, Dp=Dp, Hp=Hp, Op=Op, cores=cores)
    return (w1_p, b1_p, w3_p, b3_p), meta


# ---------------------------------------------------------------------------
# Jitted per-call forward: only x pad/cast + pallas_call + output slice.
# ---------------------------------------------------------------------------
@functools.partial(jax.jit, static_argnames=("meta", "block_m"))
def _forward_impl(x, w1_p, b1_p, w3_p, b3_p, *, meta, block_m=512):
    B, D = x.shape
    assert D == meta.D, f"input feature dim {D} != expected {meta.D}"
    Dp, Hp, Op = meta.Dp, meta.Hp, meta.Op

    # Batch tile: >=16 rows so the bf16 x tile fills packed vregs.  On chips
    # with >1 TensorCore, shrink toward B/cores so the 'parallel' batch axis
    # has at least one grid step per core (when B is large enough to matter).
    tm = min(block_m, _round_up(B, 16))
    if meta.cores > 1 and B >= 32:
        tm = min(tm, _round_up(-(-B // meta.cores), 16))
    Bp = _round_up(B, tm)

    x_p = _pad2d(x.astype(jnp.bfloat16), Bp, Dp)

    # VMEM budget: weights/biases single-buffered (grid-invariant), x/out tiles
    # double-buffered; 2x headroom, capped below physical VMEM (v7x: 64 MiB/TC).
    weight_bytes = Dp * Hp * 2 + Hp * Op * 2 + Hp * 4 + Op * 4
    tile_bytes = 2 * (tm * Dp * 2) + 2 * (tm * Op * 4)
    vmem_limit = int(min(max(2 * (weight_bytes + tile_bytes), 4 << 20), 64 << 20))

    def _resident(shape):
        # Grid-invariant block: same (0, 0) index every step -> single buffer.
        return pl.BlockSpec(shape, lambda i: (0, 0),
                            pipeline_mode=pl.Buffered(1))

    grid = (Bp // tm,)
    y_p = pl.pallas_call(
        _mlp_kernel,
        out_shape=jax.ShapeDtypeStruct((Bp, Op), jnp.float32),
        grid_spec=pltpu.PrefetchScalarGridSpec(
            num_scalar_prefetch=0,
            grid=grid,
            in_specs=[
                pl.BlockSpec((tm, Dp), lambda i: (i, 0)),  # x tile, pipelined
                _resident((Dp, Hp)),                       # w1 (in, out)
                _resident((1, Hp)),                        # b1
                _resident((Hp, Op)),                       # w3 (in, out)
                _resident((1, Op)),                        # b3
            ],
            out_specs=pl.BlockSpec((tm, Op), lambda i: (i, 0)),
        ),
        compiler_params=pltpu.CompilerParams(
            dimension_semantics=("parallel",),
            vmem_limit_bytes=vmem_limit,
        ),
    )(x_p, w1_p, b1_p, w3_p, b3_p)

    # Slice padded rows/lanes back to the logical shape (f32 output).
    return y_p[:B, :meta.O]


def linear_forward(x, prepared, *, block_m=512):
    """x: (B, input_size) array; prepared = prepare_params(params)."""
    arrays, meta = prepared
    return _forward_impl(x, *arrays, meta=meta, block_m=block_m)


# ---------------------------------------------------------------------------
# Parameter init mimicking torch.nn.Linear's uniform(-1/sqrt(fan_in), +).
# ---------------------------------------------------------------------------
def init_params(key, input_size, hidden1_size, hidden2_size, output_size):
    ks = jax.random.split(key, 6)

    def _layer(kw, kb, fan_out, fan_in):
        bound = 1.0 / jnp.sqrt(fan_in)
        w = jax.random.uniform(kw, (fan_out, fan_in), jnp.float32, -bound, bound)
        b = jax.random.uniform(kb, (fan_out,), jnp.float32, -bound, bound)
        return w, b

    w1, b1 = _layer(ks[0], ks[1], hidden1_size, input_size)
    w2, b2 = _layer(ks[2], ks[3], hidden2_size, hidden1_size)  # unused in forward
    w3, b3 = _layer(ks[4], ks[5], output_size, hidden2_size)
    return (w1, b1, w2, b2, w3, b3)


if __name__ == "__main__":
    # Small shapes consistent with the MLP classifier:
    # batch=8, input_size=64, hidden1=hidden2=32, output=10
    B, D, H1, H2, O = 8, 64, 32, 32, 10

    key = jax.random.PRNGKey(0)
    k_x, k_p = jax.random.split(key)
    x = jax.random.normal(k_x, (B, D), jnp.float32)
    params = init_params(k_p, D, H1, H2, O)

    prepared = prepare_params(params)       # one-time weight layout prep
    y = linear_forward(x, prepared)
    y = jax.block_until_ready(y)
    assert y.shape == (B, O)
    assert y.dtype == jnp.float32

    w1, b1, _w2, _b2, w3, b3 = params

    # Reference with the same bf16-operand / f32-accumulate path as the kernel.
    xb = x.astype(jnp.bfloat16)
    w1b = w1.T.astype(jnp.bfloat16)
    w3b = w3.T.astype(jnp.bfloat16)
    z1 = jnp.maximum(
        jnp.dot(xb, w1b, preferred_element_type=jnp.float32) + b1, 0.0)
    y_ref_bf16 = jnp.dot(z1.astype(jnp.bfloat16), w3b,
                         preferred_element_type=jnp.float32) + b3
    assert jnp.allclose(y, y_ref_bf16, atol=1e-3, rtol=1e-3)

    # Coarse check against the exact f32 module semantics (ReLU applied twice,
    # which is idempotent); bf16 operand rounding bounds the difference.
    z1_f32 = jnp.maximum(x @ w1.T + b1, 0.0)
    z2_f32 = jnp.maximum(z1_f32, 0.0)
    y_ref_f32 = z2_f32 @ w3.T + b3
    assert jnp.allclose(y, y_ref_f32, atol=5e-2, rtol=5e-2)

    print("KERNEL_OK")
</pallas_src>

<mosaic_0001>
module attributes {stable_mosaic.version = 11 : i64} {
  func.func @_mlp_kernel(%arg0: i32, %arg1: memref<16x128xbf16, #tpu.memory_space<vmem>>, %arg2: memref<128x128xbf16, #tpu.memory_space<vmem>>, %arg3: memref<1x128xf32, #tpu.memory_space<vmem>>, %arg4: memref<128x128xbf16, #tpu.memory_space<vmem>>, %arg5: memref<1x128xf32, #tpu.memory_space<vmem>>, %arg6: memref<16x128xf32, #tpu.memory_space<vmem>>) attributes {dimension_semantics = [#tpu.dimension_semantics<parallel>], iteration_bounds = array<i64: 1>, scalar_prefetch = 0 : i64, scratch_operands = 0 : i64, tpu.core_type = #tpu.core_type<tc>, window_params = [{transform_indices = @transform_0, window_bounds = array<i64: 16, 128>}, {pipeline_mode = #tpu.pipeline_mode<synchronous>, transform_indices = @transform_1, window_bounds = array<i64: 128, 128>}, {pipeline_mode = #tpu.pipeline_mode<synchronous>, transform_indices = @transform_2, window_bounds = array<i64: 1, 128>}, {pipeline_mode = #tpu.pipeline_mode<synchronous>, transform_indices = @transform_3, window_bounds = array<i64: 128, 128>}, {pipeline_mode = #tpu.pipeline_mode<synchronous>, transform_indices = @transform_4, window_bounds = array<i64: 1, 128>}, {transform_indices = @transform_5, window_bounds = array<i64: 16, 128>}]} {
    %c0 = arith.constant 0 : index
    %c0_0 = arith.constant 0 : index
    %0 = vector.load %arg1[%c0, %c0_0] : memref<16x128xbf16, #tpu.memory_space<vmem>>, vector<16x128xbf16>
    %c0_1 = arith.constant 0 : index
    %c0_2 = arith.constant 0 : index
    %1 = vector.load %arg2[%c0_1, %c0_2] : memref<128x128xbf16, #tpu.memory_space<vmem>>, vector<128x128xbf16>
    %cst = arith.constant dense<0.000000e+00> : vector<16x128xf32>
    %2 = tpu.matmul %0, %1, %cst {dimension_numbers = #tpu.dot_dimension_numbers<[1], [0], [0], [1], [0, 0, 1, 1], [], []>} : vector<16x128xbf16>, vector<128x128xbf16>, vector<16x128xf32> -> vector<16x128xf32>
    %c0_3 = arith.constant 0 : index
    %c0_4 = arith.constant 0 : index
    %3 = vector.load %arg3[%c0_3, %c0_4] : memref<1x128xf32, #tpu.memory_space<vmem>>, vector<1x128xf32>
    %4 = vector.broadcast %3 : vector<1x128xf32> to vector<16x128xf32>
    %5 = arith.addf %2, %4 : vector<16x128xf32>
    %cst_5 = arith.constant 0.000000e+00 : f32
    %6 = vector.broadcast %cst_5 : f32 to vector<16x128xf32>
    %7 = arith.maximumf %5, %6 : vector<16x128xf32>
    %8 = arith.truncf %7 : vector<16x128xf32> to vector<16x128xbf16>
    %c0_6 = arith.constant 0 : index
    %c0_7 = arith.constant 0 : index
    %9 = vector.load %arg4[%c0_6, %c0_7] : memref<128x128xbf16, #tpu.memory_space<vmem>>, vector<128x128xbf16>
    %cst_8 = arith.constant dense<0.000000e+00> : vector<16x128xf32>
    %10 = tpu.matmul %8, %9, %cst_8 {dimension_numbers = #tpu.dot_dimension_numbers<[1], [0], [0], [1], [0, 0, 1, 1], [], []>} : vector<16x128xbf16>, vector<128x128xbf16>, vector<16x128xf32> -> vector<16x128xf32>
    %c0_9 = arith.constant 0 : index
    %c0_10 = arith.constant 0 : index
    %11 = vector.load %arg5[%c0_9, %c0_10] : memref<1x128xf32, #tpu.memory_space<vmem>>, vector<1x128xf32>
    %12 = vector.broadcast %11 : vector<1x128xf32> to vector<16x128xf32>
    %13 = arith.addf %10, %12 : vector<16x128xf32>
    %c0_11 = arith.constant 0 : index
    %c0_12 = arith.constant 0 : index
    %14 = vector.load %arg6[%c0_11, %c0_12] : memref<16x128xf32, #tpu.memory_space<vmem>>, vector<16x128xf32>
    tpu.vector_store %arg6[%c0_11, %c0_12], %13 {strides = array<i32>} : memref<16x128xf32, #tpu.memory_space<vmem>>, vector<16x128xf32>,
    return
  }
  func.func @transform_0(%arg0: i32) -> (i32, i32) {
    %c0_i32 = arith.constant 0 : i32
    %c0_i32_0 = arith.constant 0 : i32
    return %arg0, %c0_i32 : i32, i32
  }
  func.func @transform_1(%arg0: i32) -> (i32, i32) {
    %c0_i32 = arith.constant 0 : i32
    %c0_i32_0 = arith.constant 0 : i32
    %c0_i32_1 = arith.constant 0 : i32
    return %c0_i32, %c0_i32_0 : i32, i32
  }
  func.func @transform_2(%arg0: i32) -> (i32, i32) {
    %c0_i32 = arith.constant 0 : i32
    %c0_i32_0 = arith.constant 0 : i32
    %c0_i32_1 = arith.constant 0 : i32
    return %c0_i32, %c0_i32_0 : i32, i32
  }
  func.func @transform_3(%arg0: i32) -> (i32, i32) {
    %c0_i32 = arith.constant 0 : i32
    %c0_i32_0 = arith.constant 0 : i32
    %c0_i32_1 = arith.constant 0 : i32
    return %c0_i32, %c0_i32_0 : i32, i32
  }
  func.func @transform_4(%arg0: i32) -> (i32, i32) {
    %c0_i32 = arith.constant 0 : i32
    %c0_i32_0 = arith.constant 0 : i32
    %c0_i32_1 = arith.constant 0 : i32
    return %c0_i32, %c0_i32_0 : i32, i32
  }
  func.func @transform_5(%arg0: i32) -> (i32, i32) {
    %c0_i32 = arith.constant 0 : i32
    %c0_i32_0 = arith.constant 0 : i32
    return %arg0, %c0_i32 : i32, i32
  }
}

</mosaic_0001>

<bundles_post_ra>
// kernel: _forward_impl.1
= control target key start
LH: loop header
LB: loop body
LE: loop exit
PB: predicated region body
PF: predicated region fallthrough
CT: control target
= control target key end

     0   :  { %10 = vsyncpa [#allocation3], 0  ;;  %s433_s0 = inlined_call_operand.vmem [shape: bf16[16,128], index: 0, kind: input, shape index: {}]   ;;  %s434_s1 = inlined_call_operand.hbm [shape: bf16[128,128], index: 1, kind: input, shape index: {}]   ;;  %s435_s2 = inlined_call_operand.vmem [shape: f32[1,128], index: 2, kind: input, shape index: {}]   ;;  %s436_s3 = inlined_call_operand.hbm [shape: bf16[128,128], index: 3, kind: input, shape index: {}]   ;;  %s437_s4 = inlined_call_operand.vmem [shape: f32[1,128], index: 4, kind: input, shape index: {}]   ;;  %s438_s5 = inlined_call_operand.vmem [shape: f32[16,128], index: 5, kind: output, shape index: {}]  }
   0x1   :  { %s18_s20 = sshll.u32 %s434_s1, 4  ;;  %s19_s20 = int_to_ptr.hbm [resolvable:$true] %s18_s20 }
   0x2   :  { %11 = vsyncpa [#allocation5], 0  ;;  %s378_s21 = smov [#allocation2]   ;;  %s33_s25 = sshll.u32 %s436_s3, 4  ;;  %s34_s25 = int_to_ptr.hbm [resolvable:$true] %s33_s25 }
   0x3   :  { %s20_s22 = sshll.u32 %s378_s21, 4  ;;  %s379_s26 = smov 64   ;;  %s21_s22 = int_to_ptr.vmem [resolvable:$true] %s20_s22 }
   0x4   :  { %s380_s27 = smov 4   ;;  %s381_s28 = smov [#allocation4]  }
   0x5   :  { %26 = dma.hbm_to_vmem [thread:$0]  %s19_s20, 1024, %s21_s22, [#allocation3], %s379_s26, %s379_s26, %s380_s27  }
   0x6   :  { %s35_s29 = sshll.u32 %s381_s28, 4  ;;  %s36_s29 = int_to_ptr.vmem [resolvable:$true] %s35_s29 }
   0x7   :  { %41 = dma.hbm_to_vmem [thread:$0]  %s34_s25, 1024, %s36_s29, [#allocation5], %s379_s26, %s379_s26, %s380_s27  }
   0x8   :  { %374 = dma.done.wait [#allocation3], 1024  }
   0x9   :  { %375 = vsyncadd [#allocation3], 4294966272 }
   0xa   :  { %376 = dma.done.wait [#allocation5], 1024  }
   0xb   :  { %377 = vsyncadd [#allocation5], 4294966272  ;;  %v311_v0 = vld [vmem:[#allocation2 + $0x38] sm:$0xff]  ;;  %v310_v1 = vld [vmem:[#allocation2 + $0x30] sm:$0xff] }
   0xc   :  { %128 = vmatpush.bf16.msra.mxu0 %v311_v0  ;;  %v319_v2 = vld [vmem:[#allocation4 + $0x38] sm:$0xff]  ;;  %v318_v3 = vld [vmem:[#allocation4 + $0x30] sm:$0xff]  ;;  %v309_v4 = vld [vmem:[#allocation2 + $0x28] sm:$0xff] }
   0xd   :  { %213 = vmatpush.bf16.msra.mxu1 %v319_v2  ;;  %v317_v5 = vld [vmem:[#allocation4 + $0x28] sm:$0xff]  ;;  %v308_v6 = vld [vmem:[#allocation2 + $0x20] sm:$0xff]  ;;  %v307_v8 = vld [vmem:[#allocation2 + $0x18] sm:$0xff] }
   0xe   :  { %v316_v7 = vld [vmem:[#allocation4 + $0x20] sm:$0xff]  ;;  %v306_v9 = vld [vmem:[#allocation2 + $0x10] sm:$0xff]  ;;  %v305_v10 = vld [vmem:[#allocation2 + $0x8] sm:$0xff] }
   0xf   :  { %v304_v11 = vld [vmem:[#allocation2] sm:$0xff]  ;;  %v315_v13 = vld [vmem:[#allocation4 + $0x18] sm:$0xff]  ;;  %v314_v14 = vld [vmem:[#allocation4 + $0x10] sm:$0xff] }
  0x10   :  { %129 = vmatpush.bf16.msra.mxu0 %v310_v1  ;;  %v303_v12 = vld [vmem:[%s433_s0] sm:$0xff]  ;;  %v313_v15 = vld [vmem:[#allocation4 + $0x8] sm:$0xff] }
  0x11   :  { %214 = vmatpush.bf16.msra.mxu1 %v318_v3  ;;  %v312_v16 = vld [vmem:[#allocation4] sm:$0xff] }
  0x12   :  { %v324_v18 = vld [vmem:[%s435_s2] ss:$0 sm:$0xff] }
  0x13   :  { %v325_v25 = vld [vmem:[%s437_s4] ss:$0 sm:$0xff] }
  0x14   :  { %130 = vmatpush.bf16.msra.mxu0 %v309_v4 }
  0x15   :  { %215 = vmatpush.bf16.msra.mxu1 %v317_v5 }
  0x18   :  { %131 = vmatpush.bf16.msra.mxu0 %v308_v6 }
  0x19   :  { %216 = vmatpush.bf16.msra.mxu1 %v316_v7 }
  0x1c   :  { %132 = vmatpush.bf16.msra.mxu0 %v307_v8 }
  0x1d   :  { %217 = vmatpush.bf16.msra.mxu1 %v315_v13 }
  0x20   :  { %133 = vmatpush.bf16.msra.mxu0 %v306_v9 }
  0x21   :  { %218 = vmatpush.bf16.msra.mxu1 %v314_v14 }
  0x24   :  { %134 = vmatpush.bf16.msra.mxu0 %v305_v10 }
  0x25   :  { %219 = vmatpush.bf16.msra.mxu1 %v313_v15 }
  0x28   :  { %135 = vmatpush.bf16.msra.mxu0 %v304_v11 }
  0x29   :  { %220 = vmatpush.bf16.msra.mxu1 %v312_v16 }
  0x2b   :  { %136 = vmatmul.bf16.vlgmr.msra.gmra.mxu0 %v303_v12 }
  0xa8   :  { %v137_v17 = vpop.f32.mrf.mxu0 }
  0xa9   :  { %v138_v19 = vadd.f32 %v324_v18, %v137_v17 }
  0xab   :  { %v142_v22 = vmax.f32 %v138_v19, 0.0 }
  0xb0   :  { %v139_v20 = vpop.f32.mrf.mxu0 }
  0xb1   :  { %v140_v21 = vadd.f32 %v324_v18, %v139_v20 }
  0xb3   :  { %v143_v23 = vmax.f32 %v140_v21, 0.0 }
  0xb5   :  { %v144_v24 = vpack.c.bf16 %v143_v23, %v142_v22 }
  0xb7   :  { %221 = vmatmul.bf16.vlgmr.msra.gmra.mxu1 %v144_v24 }
 0x134   :  { %v222_v26 = vpop.f32.mrf.mxu1 }
 0x135   :  { %v223_v27 = vadd.f32 %v325_v25, %v222_v26 }
 0x137   :  { %227 = vst [vmem:[%s438_s5] sm:$0xff] %v223_v27 }
 0x13c   :  { %v224_v28 = vpop.f32.mrf.mxu1 }
 0x13d   :  { %v225_v29 = vadd.f32 %v325_v25, %v224_v28 }
 0x13f   :  { %228 = vst [vmem:[%s438_s5 + $0x8] sm:$0xff] %v225_v29 }
 0x140   :  { %233 = vsyncpa [#allocation3], 1 }
 0x141   :  { %234 = vsyncpa [#allocation5], 1 }

</bundles_post_ra>
